<compile_context>
chip_gen: v5e
topology: v5e:2x2
jax: 0.10.0
libtpu: 0.0.40
codegen_flags: <defaults>
</compile_context>

<pallas_src>
import jax
import jax.numpy as jnp
from jax.experimental import pallas as pl
from jax.experimental.pallas import tpu as pltpu


def _round_up(n, m):
    return ((n + m - 1) // m) * m


def _round_down(n, m):
    return (n // m) * m


def _pick_tiles(R, HW, itemsize, *, tile_budget_bytes=4 << 20, max_row_tile=1024):
    """Byte-budget tile picker; no 'must divide the extent' requirement."""
    # dtype-aware sublane packing: 8 rows/vreg for 4B, 16 for 2B, 32 for 1B.
    sub = {4: 8, 2: 16, 1: 32}.get(itemsize, 8)

    # Row tile: full extent when small (full-dim blocks are always legal),
    # otherwise a sublane-aligned cap.
    tr = R if R <= max_row_tile else _round_down(max_row_tile, sub)

    # Column tile: as many 128-lane groups as fit in the per-buffer byte budget.
    if tr * HW * itemsize <= tile_budget_bytes:
        tc = HW
    else:
        tc = max(128, _round_down(tile_budget_bytes // (tr * itemsize), 128))

    grid_r = pl.cdiv(R, tr)
    grid_c = pl.cdiv(HW, tc)

    # v7x shards "parallel" grid axes across its 2 TensorCores: avoid a
    # single-program grid when the input is big enough to split cheaply.
    if grid_r * grid_c == 1:
        if R >= 2 * sub:
            tr = _round_up(pl.cdiv(R, 2), sub)
            grid_r = pl.cdiv(R, tr)
        elif HW >= 2 * 128:
            tc = _round_up(pl.cdiv(HW, 2), 128)
            grid_c = pl.cdiv(HW, tc)

    return tr, tc, (grid_r, grid_c)


def _sin2d_kernel(freq_ref, x_ref, o_ref):
    # freq_ref: (TR, 1); x_ref / o_ref: (TR, TC).
    # Multiply + sin in the promoted dtype (f32 param * low-precision x -> f32
    # math, matching torch), then cast to the output dtype.
    o_ref[...] = jnp.sin(freq_ref[...] * x_ref[...]).astype(o_ref.dtype)


def sin2d(x_nchw, freq_param):
    """x_nchw: (B, C, H, W); freq_param: (1, C, 1, 1). Returns sin(freq * x)."""
    B, C, H, W = x_nchw.shape
    R, HW = B * C, H * W
    x_dtype = x_nchw.dtype
    out_dtype = jnp.result_type(x_dtype, freq_param.dtype)
    itemsize = jnp.dtype(x_dtype).itemsize

    # Free, contiguous reshape: rows = B*C (sublanes), cols = H*W (lanes).
    x2 = x_nchw.reshape(R, HW)
    # Per-row frequency: row b*C + c uses channel c's freq (kept at param dtype).
    freq_rows = jnp.broadcast_to(freq_param.reshape(1, C), (B, C)).reshape(R, 1)

    tr, tc, grid = _pick_tiles(R, HW, itemsize)

    cost = pl.CostEstimate(
        flops=R * HW,                                   # one mul per element
        transcendentals=R * HW,                         # one sin per element
        bytes_accessed=R * HW * (itemsize + jnp.dtype(out_dtype).itemsize)
        + R * jnp.dtype(freq_rows.dtype).itemsize,
    )

    out = pl.pallas_call(
        _sin2d_kernel,
        out_shape=jax.ShapeDtypeStruct((R, HW), out_dtype),
        grid_spec=pltpu.PrefetchScalarGridSpec(
            num_scalar_prefetch=0,
            grid=grid,  # rows outer, cols inner -> freq block constant over j
            in_specs=[
                # freq: tiny (TR, 1) block, varies only with the row-tile index.
                pl.BlockSpec((tr, 1), lambda i, j: (i, 0)),
                # x: lane-dense (TR, TC) tile; ragged last blocks are masked.
                pl.BlockSpec((tr, tc), lambda i, j: (i, j)),
            ],
            out_specs=pl.BlockSpec((tr, tc), lambda i, j: (i, j)),
        ),
        compiler_params=pltpu.CompilerParams(
            dimension_semantics=("parallel", "parallel"),
            # ~16 MiB actual working set; 48 MiB leaves headroom on v5e/v6e
            # (128 MiB VMEM) while staying safe on v7x (64 MiB).
            vmem_limit_bytes=48 * 1024 * 1024,
        ),
        cost_estimate=cost,
    )(freq_rows, x2)

    return out.reshape(B, C, H, W)


if __name__ == "__main__":
    w = 10.0

    # Aligned shape consistent with the module (NCHW).
    B, C, H, W = 2, 4, 16, 16
    x = jax.random.normal(jax.random.PRNGKey(0), (B, C, H, W), dtype=jnp.float32)
    # Deterministic param init, matching nn.Parameter(w * torch.ones(1, dim, 1, 1)).
    freq = w * jnp.ones((1, C, 1, 1), dtype=jnp.float32)

    y = jax.block_until_ready(sin2d(x, freq))
    y_ref = jnp.sin(freq * x)
    assert y.shape == (B, C, H, W)
    assert y.dtype == y_ref.dtype
    assert jnp.allclose(y, y_ref, atol=1e-5, rtol=1e-5)

    # Unaligned shape: exercises the no-pad / masked-last-block path.
    B2, C2, H2, W2 = 1, 3, 10, 30
    x_b = jax.random.normal(jax.random.PRNGKey(1), (B2, C2, H2, W2), dtype=jnp.float32)
    freq_b = w * jnp.ones((1, C2, 1, 1), dtype=jnp.float32)
    y_b = jax.block_until_ready(sin2d(x_b, freq_b))
    assert jnp.allclose(y_b, jnp.sin(freq_b * x_b), atol=1e-5, rtol=1e-5)

    print("KERNEL_OK")
</pallas_src>

<mosaic_0001>
module attributes {stable_mosaic.version = 11 : i64} {
  func.func @_sin2d_kernel(%arg0: i32, %arg1: i32, %arg2: memref<8x1xf32, #tpu.memory_space<vmem>>, %arg3: memref<8x128xf32, #tpu.memory_space<vmem>>, %arg4: memref<8x128xf32, #tpu.memory_space<vmem>>) attributes {dimension_semantics = [#tpu.dimension_semantics<parallel>, #tpu.dimension_semantics<parallel>], iteration_bounds = array<i64: 1, 2>, scalar_prefetch = 0 : i64, scratch_operands = 0 : i64, tpu.core_type = #tpu.core_type<tc>, window_params = [{transform_indices = @transform_0, window_bounds = array<i64: 8, 1>}, {transform_indices = @transform_1, window_bounds = array<i64: 8, 128>}, {transform_indices = @transform_2, window_bounds = array<i64: 8, 128>}]} {
    %c0 = arith.constant 0 : index
    %c0_0 = arith.constant 0 : index
    %0 = vector.load %arg2[%c0, %c0_0] : memref<8x1xf32, #tpu.memory_space<vmem>>, vector<8x1xf32>
    %c0_1 = arith.constant 0 : index
    %c0_2 = arith.constant 0 : index
    %1 = vector.load %arg3[%c0_1, %c0_2] : memref<8x128xf32, #tpu.memory_space<vmem>>, vector<8x128xf32>
    %2 = vector.broadcast %0 : vector<8x1xf32> to vector<8x128xf32>
    %3 = arith.mulf %2, %1 : vector<8x128xf32>
    %4 = math.sin %3 : vector<8x128xf32>
    %c0_3 = arith.constant 0 : index
    %c0_4 = arith.constant 0 : index
    %5 = vector.load %arg4[%c0_3, %c0_4] : memref<8x128xf32, #tpu.memory_space<vmem>>, vector<8x128xf32>
    tpu.vector_store %arg4[%c0_3, %c0_4], %4 {strides = array<i32>} : memref<8x128xf32, #tpu.memory_space<vmem>>, vector<8x128xf32>,
    return
  }
  func.func @transform_0(%arg0: i32, %arg1: i32) -> (i32, i32) {
    %c0_i32 = arith.constant 0 : i32
    %c0_i32_0 = arith.constant 0 : i32
    return %arg0, %c0_i32 : i32, i32
  }
  func.func @transform_1(%arg0: i32, %arg1: i32) -> (i32, i32) {
    %c0_i32 = arith.constant 0 : i32
    return %arg0, %arg1 : i32, i32
  }
  func.func @transform_2(%arg0: i32, %arg1: i32) -> (i32, i32) {
    %c0_i32 = arith.constant 0 : i32
    return %arg0, %arg1 : i32, i32
  }
}

</mosaic_0001>

<bundles_post_ra>
// kernel: tpu_custom_call.1
= control target key start
LH: loop header
LB: loop body
LE: loop exit
PB: predicated region body
PF: predicated region fallthrough
CT: control target
= control target key end

     0   :  { %7 = vsyncpa [#allocation3], 0  ;;  %s886_s0 = inlined_call_operand.vmem [shape: f32[8,1], index: 0, kind: input, shape index: {}]   ;;  %s887_s1 = inlined_call_operand.hbm [shape: f32[8,256], index: 1, kind: input, shape index: {}]   ;;  %s888_s2 = inlined_call_operand.hbm [shape: f32[8,256], index: 2, kind: output, shape index: {}]  }
   0x1   :  { %9 = vsyncpa [#allocation3 + $0x1], 0 }
   0x2   :  { %10 = vsyncpa [#allocation4], 0 }
   0x3   :  { %12 = vsyncpa [#allocation4 + $0x1], 0  ;;  %s698_s9 = smov 0   ;;  %s700_s10 = smov 0  }
   0x4   :  { %s702_s11 = smov 0   ;;  %s704_s12 = smov 0  }
   0x5   :  { %s706_s13 = smov 0   ;;  %s708_s14 = smov 0  }
   0x6 LB: > { %s475_s15 = sadd.s32 4294967295, %s674_s14   ;;  %s476_s16 = sadd.s32 4294967294, %s674_s14   ;;  %s674_s14 = sphi %s708_s14, %s18_s14   ;;  %s670_s13 = sphi %s706_s13, %s897_s13   ;;  %s666_s12 = sphi %s704_s12, %s896_s12   ;;  %s662_s11 = sphi %s702_s11, %s895_s11   ;;  %s658_s10 = sphi %s700_s10, %s894_s10   ;;  %s654_s9 = sphi %s698_s9, %s893_s9  }
   0x7   : > { %s27_s17 = sadd.s32 1, %s670_s13  ;;  %s65_s18 = sadd.s32 1, %s662_s11 }
   0x8   : > { %p28_p0 = scmp.ge.s32.totalorder %s27_s17, 2  ;;  %p72_p1 = scmp.ne.s32.totalorder %s662_s11, %s658_s10 }
   0x9   : > { %p73_p2 = scmp.eq.s32.totalorder %s674_s14, 0  ;;  %p78_p3 = scmp.ne.s32.totalorder %s658_s10, %s654_s9 }
   0xa   : > { %s899_s17 = smov (%p28_p0, %s27_s17), 0  ;;  %p79_p5 = scmp.eq.s32.totalorder %s475_s15, 0 }
   0xb   : > { %p739_p4 = por %p73_p2, %p72_p1  ;;  %s61_s20 = ssub.s32 %s670_s13, %s899_s17 }
   0xc   : > { %p104_p6 = scmp.eq.s32.totalorder %s475_s15, 1  ;;  %p63_p7 = scmp.eq.s32.totalorder %s61_s20, 0 }
   0xd   : > { %p745_p8 = por %p79_p5, %p78_p3  ;;  %p110_p10 = scmp.eq.s32.totalorder %s476_s16, 1 }
   0xe   : > { %p749_p9 = por %p104_p6, %p72_p1  ;;  %p479_p12 = scmp.ge.s32.totalorder %s674_s14, 2 }
   0xf   : > { %s754_s23 = scalar_select %p63_p7, %s662_s11, %s65_s18  }
  0x10   : > { %p756_p11 = por %p110_p10, %p78_p3  ;;  %p504_p13 = scmp.lt.s32.totalorder %s674_s14, 2 }
  0x11   : > { %s137_s25 = sand.u32 1, %s662_s11   ;;  %s481_s27 = sshll.u32 %s670_s13, 3 }
  0x12   : > { %s480_s26 = sshll.u32 %s137_s25, 3  ;;  %s147_s30 = scalar_lea.hbm %s887_s1, %s481_s27 }
  0x13   : > { %s141_s3 = scalar_lea.vmem [#allocation2], %s480_s26  ;;  %s149_s5 = sshll.u32 %s147_s30, 4  ;;  %s150_s5 = int_to_ptr.hbm [resolvable:$true] %s149_s5 }
  0x14   : > { %s151_s4 = sshll.u32 %s141_s3, 4  ;;  %p497_p0 = pnand %p504_p13, %p739_p4  ;;  %s152_s4 = int_to_ptr.vmem [resolvable:$true] %s151_s4 }
  0x15   : > { %p482_p1 = scmp.ge.s32.totalorder %s674_s14, 1  ;;  %p156_p2 = scmp.lt.s32.totalorder %s674_s14, 3 }
  0x16   : > { %s138_s6 = scalar_lea.sflag [#allocation3], %s137_s25 }
  0x17   : > { %499 = dma.hbm_to_vmem [thread:$0]  (!%p497_p0), %s150_s5, 128, %s152_s4, %s138_s6  }
  0x18   : > { %p157_p3 = pnand %p482_p1, %p156_p2 }
  0x19   : > { %s772_s7 = sand.u32 (!%p157_p3), 1, %s658_s10  }
  0x1a   : > { %160 = sbr.rel (%p157_p3) target bundleno = 250 (0xfa), region = 28  ;;  %s483_s8 = sshll.u32 (!%p157_p3), %s772_s7, 3 }
  0x1b   : > { %s163_s15 = scalar_lea.sflag (!%p157_p3), [#allocation3], %s772_s7  ;;  %s166_s16 = scalar_lea.vmem (!%p157_p3), [#allocation2], %s483_s8 }
  0x1f   : > { %645 = dma.done.wait (%p745_p8), %s163_s15, 128  }
  0x20   : > { %647 = vsyncadd (%p745_p8), %s163_s15, 4294967168  ;;  %v676_v0 = vmov 0   ;;  %v196_v1 = vld [vmem:[%s886_s0] sm:$0xff]  ;;  %v677_v16 = vmov 683565275   ;;  %s489_s20 = sshll.u32 %s666_s12, 3 }
  0x21   : > { %561 = vset.pattern.permute.xlu0 %v676_v0  ;;  %v197_v2 = vld [vmem:[%s166_s16] sm:$0xff]  ;;  %v678_v18 = vmov 2475754826   ;;  %v679_v21 = vmov 2131351028   ;;  %s373_s26 = scalar_lea.hbm %s888_s2, %s489_s20  ;;  %s191_s27 = scalar_lea.vmem [#allocation5], %s483_s8 }
  0x22   : > { %200 = vperm.xlu0 %561, %v196_v1   ;;  %v680_v24 = vmov 2102212464   ;;  %v681_v27 = vmov 920167782   ;;  %v682_v30 = vmov 1326507024  }
  0x23   : > { %s375_s28 = sshll.u32 %s191_s27, 4  ;;  %s377_s29 = sshll.u32 %s373_s26, 4  ;;  %s376_s28 = int_to_ptr.vmem [resolvable:$true] %s375_s28  ;;  %s378_s29 = int_to_ptr.hbm [resolvable:$true] %s377_s29 }
  0x24   : > { %s361_s12 = scalar_lea.sflag [#allocation4], %s772_s7  ;;  %s606_s30 = sshra.s32 %s378_s29, 4  ;;  %s607_s30 = int_to_ptr.hbm [resolvable:$true] %s606_s30 }
  0x25   : > { %s608_s3 = scalar_lea.hbm %s607_s30, 8  ;;  %s612_s6 = scalar_lea.hbm %s888_s2, 16 }
  0x26   : > { %p609_p4 = scmp.ne.s32.totalorder %s607_s30, %s608_s3  ;;  %p613_p7 = scmp.lt.s32.totalorder %s607_s30, %s888_s2 }
  0x27   : > { %p614_p8 = scmp.lt.s32.totalorder %s612_s6, %s608_s3 }
  0x28   : > { %p610_p5 = pnand %p609_p4, %p749_p9 }
  0x29   : > { %p615_p10 = por %p614_p8, %p613_p7 }
  0x2a   : > { %p611_p6 = pneg %p610_p5 }
  0x2c   : > { %p616_p13 = pnand %p615_p10, %p611_p6 }
  0x94   : > { %v201_v3 = vpop.permute.xlu0 %200 }
  0x95   : > { %v786_v4 = vmul.f32 %v201_v3, %v197_v2 }
  0x97   : > { %v207_v5 = vand.u32 2139095040, %v786_v4  ;;  %v204_v8 = vand.u32 2147483647, %v786_v4  ;;  %vm206_vm12 = vcmp.lt.s32.totalorder %v786_v4, 0 }
  0x99   : > { %v208_v6 = vshrl.u32 %v207_v5, 23  ;;  %v211_v10 = vand.u32 8388607, %v204_v8  ;;  %vm205_vm13 = vcmp.le.f32.partialorder %v204_v8, 0.7853982 }
  0x9b   : > { %v485_v7 = vadd.s32 4294967169, %v208_v6  ;;  %v212_v14 = vor.u32 8388608, %v211_v10 }
  0x9d   : > { %v214_v9 = vadd.s32 1, %v485_v7  ;;  %v803_v37 = vshll.u32 %v212_v14, 8 }
  0x9f   : > { %vm215_vm0 = vcmp.gt.s32.totalorder %v214_v9, 0  ;;  %v253_v46 = vand.u32 65535, %v803_v37  ;;  %v254_v47 = vshrl.u32 %v803_v37, 16 }
  0xa0   : > { %v216_v11 = vsel %vm215_vm0, %v214_v9, 0 }
  0xa1   : > { %v218_v12 = vand.u32 31, %v216_v11  ;;  %v794_v15 = vshrl.u32 %v216_v11, 5 }
  0xa3   : > { %v792_v13 = vsub.s32 32, %v218_v12  ;;  %v221_v17 = vshll.u32 %v677_v16, %v218_v12  ;;  %v224_v19 = vshll.u32 %v678_v18, %v218_v12  ;;  %v227_v23 = vshll.u32 %v679_v21, %v218_v12 }
  0xa4   : > { %v230_v26 = vshll.u32 %v680_v24, %v218_v12  ;;  %v233_v29 = vshll.u32 %v681_v27, %v218_v12  ;;  %vm236_vm1 = vcmp.lt.s32.totalorder %v794_v15, 1  ;;  %vm239_vm2 = vcmp.lt.s32.totalorder %v794_v15, 4 }
  0xa5   : > { %v222_v20 = vshrl.u32 %v678_v18, %v792_v13  ;;  %v225_v22 = vshrl.u32 %v679_v21, %v792_v13  ;;  %v228_v25 = vshrl.u32 %v680_v24, %v792_v13  ;;  %v231_v28 = vshrl.u32 %v681_v27, %v792_v13 }
  0xa6   : > { %v234_v31 = vshrl.u32 %v682_v30, %v792_v13  ;;  %vm238_vm3 = vcmp.lt.s32.totalorder %v794_v15, 3  ;;  %vm237_vm4 = vcmp.lt.s32.totalorder %v794_v15, 2  ;;  %v220_v11 = vshrl.u32 %v677_v16, %v792_v13 }
  0xa7   : > { %v223_v32 = vor.u32 %v222_v20, %v221_v17  ;;  %v226_v33 = vor.u32 %v225_v22, %v224_v19  ;;  %v229_v34 = vor.u32 %v228_v25, %v227_v23  ;;  %v232_v35 = vor.u32 %v231_v28, %v230_v26 }
  0xa8   : > { %v235_v36 = vor.u32 %v234_v31, %v233_v29 }
  0xa9   : > { %v244_v38 = vsel %vm236_vm1, %v223_v32, %v226_v33  ;;  %v248_v39 = vsel %vm236_vm1, %v226_v33, %v229_v34  ;;  %v245_v40 = vsel %vm239_vm2, %v232_v35, 920167782  ;;  %v241_v7 = vsel %vm239_vm2, %v229_v34, 2102212464 }
  0xaa   : > { %v249_v41 = vsel %vm239_vm2, %v235_v36, 1326507024  ;;  %v246_v42 = vsel %vm238_vm3, %v229_v34, %v245_v40  ;;  %v240_v20 = vsel %vm236_vm1, %v220_v11, %v223_v32  ;;  %v242_v21 = vsel %vm238_vm3, %v226_v33, %v241_v7 }
  0xab   : > { %v250_v43 = vsel %vm238_vm3, %v232_v35, %v249_v41  ;;  %v247_v44 = vsel %vm237_vm4, %v244_v38, %v246_v42  ;;  %v243_v13 = vsel %vm237_vm4, %v240_v20, %v242_v21  ;;  %vm347_vm1 = vweird.f32 %v786_v4 }
  0xac   : > { %v251_v45 = vsel %vm237_vm4, %v248_v39, %v250_v43  ;;  %v277_v50 = vand.u32 65535, %v247_v44  ;;  %v278_v51 = vshrl.u32 %v247_v44, 16  ;;  %v297_v28 = vmul.u32 %v803_v37, %v243_v13 }
  0xad   : > { %v255_v48 = vand.u32 65535, %v251_v45  ;;  %v256_v49 = vshrl.u32 %v251_v45, 16 }
  0xae   : > { %v280_v54 = vmul.u32 %v278_v51, %v253_v46  ;;  %v281_v55 = vmul.u32 %v277_v50, %v254_v47  ;;  %v279_v59 = vmul.u32 %v277_v50, %v253_v46  ;;  %v282_v63 = vmul.u32 %v278_v51, %v254_v47 }
  0xaf   : > { %v258_v52 = vmul.u32 %v256_v49, %v253_v46  ;;  %v259_v53 = vmul.u32 %v255_v48, %v254_v47  ;;  %v257_v56 = vmul.u32 %v255_v48, %v253_v46  ;;  %v260_v58 = vmul.u32 %v256_v49, %v254_v47 }
  0xb0   : > { %v283_v60 = vshll.u32 %v280_v54, 16  ;;  %v285_v2 = vshll.u32 %v281_v55, 16  ;;  %v284_v18 = vshrl.u32 %v280_v54, 16  ;;  %v286_v24 = vshrl.u32 %v281_v55, 16 }
  0xb1   : > { %v261_v57 = vshll.u32 %v258_v52, 16  ;;  %v263_v61 = vshll.u32 %v259_v53, 16  ;;  %v262_v12 = vshrl.u32 %v258_v52, 16  ;;  %v264_v22 = vshrl.u32 %v259_v53, 16 }
  0xb2   : > { %vm287_vm6 = vc.u32 %v279_v59, %v283_v60  ;;  %v289_v3 = vadd.s32 %v283_v60, %v279_v59 }
  0xb3   : > { %vm265_vm5 = vc.u32 %v257_v56, %v261_v57  ;;  %v267_v62 = vadd.s32 %v261_v57, %v257_v56  ;;  %v288_v6 = vsel %vm287_vm6, 1, %v676_v0 }
  0xb4   : > { %v266_v1 = vsel %vm265_vm5, 1, %v676_v0  ;;  %v290_v10 = vadd.s32 %v288_v6, %v282_v63  ;;  %vm291_vm8 = vc.u32 %v289_v3, %v285_v2  ;;  %v293_v27 = vadd.s32 %v289_v3, %v285_v2 }
  0xb5   : > { %v268_v5 = vadd.s32 %v266_v1, %v260_v58  ;;  %vm269_vm7 = vc.u32 %v267_v62, %v263_v61  ;;  %v292_v17 = vsel %vm291_vm8, 1, %v676_v0 }
  0xb6   : > { %v270_v9 = vsel %vm269_vm7, 1, %v676_v0  ;;  %v294_v19 = vadd.s32 %v292_v17, %v290_v10 }
  0xb7   : > { %v272_v14 = vadd.s32 %v270_v9, %v268_v5 }
  0xb8   : > { %v295_v25 = vadd.s32 %v294_v19, %v284_v18 }
  0xb9   : > { %v273_v23 = vadd.s32 %v272_v14, %v262_v12 }
  0xba   : > { %v296_v16 = vadd.s32 %v295_v25, %v286_v24 }
  0xbb   : > { %v274_v26 = vadd.s32 %v273_v23, %v264_v22 }
  0xbc   : > { %v300_v0 = vadd.s32 1, %v296_v16 }
  0xbd   : > { %vm299_vm9 = vc.u32 %v274_v26, %v293_v27  ;;  %v298_v15 = vadd.s32 %v293_v27, %v274_v26 }
  0xbe   : > { %v301_v29 = vsel %vm299_vm9, %v300_v0, %v296_v16 }
  0xbf   : > { %v302_v30 = vadd.s32 %v301_v29, %v297_v28 }
  0xc1   : > { %v303_v31 = vadd.s32 536870912, %v302_v30 }
  0xc3   : > { %v304_v32 = vshrl.u32 %v303_v31, 30 }
  0xc5   : > { %v305_v34 = vshll.u32 %v304_v32, 30  ;;  %v328_v53 = vsub.s32 4, %v304_v32 }
  0xc7   : > { %v306_v33 = vsub.s32 %v302_v30, %v305_v34  ;;  %v329_v58 = vsel %vm206_vm12, %v328_v53, %v304_v32 }
  0xc8   : > { %v331_v61 = vsel %vm205_vm13, 0, %v329_v58 }
  0xc9   : > { %vm307_vm10 = vcmp.lt.s32.totalorder %v306_v33, 0  ;;  %v308_v35 = vsub.s32 0, %v306_v33  ;;  %v348_v3 = vadd.s32 3, %v331_v61 }
  0xcb   : > { %v309_v36 = vsel %vm307_vm10, %v308_v35, %v306_v33  ;;  %v349_v9 = vand.u32 3, %v348_v3 }
  0xcc   : > { %v310_v38 = vclz %v309_v36 }
  0xcd   : > { %vm351_vm14 = vcmp.eq.s32.totalorder %v349_v9, 0  ;;  %vm354_vm15 = vcmp.eq.s32.totalorder %v349_v9, 2  ;;  %vm350_vm0 = vcmp.lt.s32.totalorder %v349_v9, 2 }
  0xce   : > { %v486_v39 = vadd.s32 4294967294, %v310_v38 }
  0xd0   : > { %vm487_vm11 = vcmp.lt.s32.totalorder %v486_v39, 0 }
  0xd1   : > { %v313_v40 = vsel %vm487_vm11, 0, %v486_v39 }
  0xd2   : > { %v314_v41 = vsub.s32 32, %v313_v40  ;;  %v318_v42 = vsub.s32 4294967266, %v313_v40  ;;  %v315_v43 = vshll.u32 %v306_v33, %v313_v40 }
  0xd4   : > { %v316_v44 = vshrl.u32 %v298_v15, %v314_v41  ;;  %v319_v45 = vadd.s32 127, %v318_v42 }
  0xd6   : > { %v317_v37 = vor.u32 %v316_v44, %v315_v43  ;;  %v320_v46 = vshll.u32 %v319_v45, 23 }
  0xd8   : > { %v321_v47 = vor.u32 4788187, %v320_v46  ;;  %v324_v49 = vcvt.s32.f32 %v317_v37 }
  0xda   : > { %v322_v48 = vand.u32 2147483647, %v321_v47 }
  0xdc   : > { %v325_v50 = vmul.f32 %v324_v49, %v322_v48 }
  0xde   : > { %v326_v51 = vxor.u32 2147483648, %v325_v50 }
  0xe0   : > { %v327_v52 = vsel %vm206_vm12, %v326_v51, %v325_v50 }
  0xe1   : > { %v330_v54 = vsel %vm205_vm13, %v786_v4, %v327_v52 }
  0xe2   : > { %v332_v55 = vmul.f32 %v330_v54, %v330_v54 }
  0xe4   : > { %v340_v56 = vmul.f32 -0.00019511016, %v332_v55  ;;  %v333_v57 = vmul.f32 -0.001358992, %v332_v55 }
  0xe6   : > { %v341_v59 = vadd.f32 0.008332121, %v340_v56  ;;  %v334_v60 = vadd.f32 0.041655596, %v333_v57 }
  0xe8   : > { %v342_v62 = vmul.f32 %v341_v59, %v332_v55  ;;  %v335_v63 = vmul.f32 %v334_v60, %v332_v55 }
  0xea   : > { %v343_v1 = vadd.f32 -0.16666654, %v342_v62  ;;  %v336_v2 = vadd.f32 -0.4999988, %v335_v63 }
  0xec   : > { %v344_v5 = vmul.f32 %v343_v1, %v332_v55  ;;  %v337_v8 = vmul.f32 %v336_v2, %v332_v55 }
  0xee   : > { %v345_v6 = vadd.f32 1.0, %v344_v5  ;;  %v338_v7 = vadd.f32 1.0, %v337_v8 }
  0xf0   : > { %v346_v10 = vmul.f32 %v345_v6, %v330_v54  ;;  %v355_v11 = vxor.u32 2147483648, %v338_v7 }
  0xf2   : > { %v352_v12 = vxor.u32 2147483648, %v346_v10  ;;  %v356_v17 = vsel %vm354_vm15, %v355_v11, %v346_v10 }
  0xf4   : > { %v353_v14 = vsel %vm351_vm14, %v338_v7, %v352_v12 }
  0xf5   : > { %v357_v18 = vsel %vm350_vm0, %v353_v14, %v356_v17 }
  0xf6   : > { %v358_v19 = vsel %vm347_vm1, nan, %v357_v18 }
  0xf7   : > { %359 = vst [vmem:[%s191_s27] sm:$0xff] %v358_v19 }
  0xf8   : > { %619 = shalt.err (!%p616_p13)
}
  0xf9   : > { %494 = dma.vmem_to_hbm [thread:$0]  (%p749_p9), %s376_s28, 128, %s378_s29, %s361_s12  }
  0xfa PF: > { %s389_s7 = sand.u32 1, %s654_s9   ;;  %p501_p0 = pnand %p479_p12, %p756_p11 }
  0xfb   : > { %s390_s16 = scalar_lea.sflag [#allocation4], %s389_s7 }
  0xfc   : > { %p502_p1 = pneg %p501_p0 }
  0xfe   : > { %649 = dma.done.wait (%p502_p1), %s390_s16, 128  }
  0xff   : > { %651 = vsyncadd (%p502_p1), %s390_s16, 4294967168  ;;  %s18_s14 = sadd.s32 1, %s674_s14   ;;  %s893_s9 = smov %s658_s10 }
 0x100   : > { %p15_p2 = scmp.ge.s32.totalorder %s18_s14, 4   ;;  %s894_s10 = smov %s662_s11 }
 0x101   : > { %s895_s11 = smov %s754_s23  ;;  %s896_s12 = smov %s670_s13 }
 0x102   : > { %s897_s13 = smov %s899_s17  ;;  %17 = sbr.rel (!%p15_p2) target bundleno = 6 (0x6), region = 76 }
 0x107   :  { %396 = vsyncpa [#allocation3], 1 }
 0x108   :  { %398 = vsyncpa [#allocation3 + $0x1], 1 }
 0x109   :  { %399 = vsyncpa [#allocation4], 1 }
 0x10a   :  { %401 = vsyncpa [#allocation4 + $0x1], 1 }

</bundles_post_ra>
